<compile_context>
chip_gen: v5e
topology: v5e:2x2
jax: 0.10.0
libtpu: 0.0.40
codegen_flags: <defaults>
</compile_context>

<pallas_src>
import functools

import jax
import jax.numpy as jnp
from jax.experimental import pallas as pl
from jax.experimental.pallas import tpu as pltpu


def _norm_mean(t2d):
    """mean((t - min)/(max - min)) via (mean - min)/(max - min)."""
    t_min = jnp.min(t2d)
    t_max = jnp.max(t2d)
    return (jnp.mean(t2d) - t_min) / (t_max - t_min)


def myloss_kernel(vc_ref, hc_ref, vs_ref, hs_ref, vhout_ref, dy_ref,
                  out_ref, ce_acc_ref, *, n_total):
    i = pl.program_id(0)
    n_steps = pl.num_programs(0)

    @pl.when(i == 0)
    def _init():
        ce_acc_ref[...] = jnp.zeros_like(ce_acc_ref)

    # ---- Cross-entropy partial sum over this N-tile --------------------------
    logits = vhout_ref[...].astype(jnp.float32)                 # (tn, C)
    tn, c = logits.shape
    m = jnp.max(logits, axis=-1, keepdims=True)                 # (tn, 1)
    lse = jnp.log(jnp.sum(jnp.exp(logits - m), axis=-1, keepdims=True)) + m

    labels = dy_ref[...]                                        # (tn, 1) int32
    col = jax.lax.broadcasted_iota(jnp.int32, (tn, c), 1)
    # select-sum gather (no one-hot multiply / int->f32 cast)
    target_logit = jnp.sum(jnp.where(col == labels, logits, 0.0),
                           axis=-1, keepdims=True)              # (tn, 1)

    # Mask padded rows of a partial last tile.
    row = jax.lax.broadcasted_iota(jnp.int32, (tn, 1), 0) + i * tn
    valid = row < n_total
    partial = jnp.sum(jnp.where(valid, lse - target_logit, 0.0),
                      axis=0, keepdims=True)                    # (1, 1)
    ce_acc_ref[...] += partial

    # ---- Finalize: distance terms + mean CE ----------------------------------
    @pl.when(i == n_steps - 1)
    def _finalize():
        # (B, D) inputs are resident for the whole grid; compute on them once.
        vc = vc_ref[...].astype(jnp.float32)
        hc = hc_ref[...].astype(jnp.float32)
        vs = vs_ref[...].astype(jnp.float32)
        hs = hs_ref[...].astype(jnp.float32)

        dvc = vc - hc
        c_temp = jnp.sqrt(jnp.sum(dvc * dvc, axis=0, keepdims=True))   # (1, D)
        vh_c = _norm_mean(c_temp)

        dvs = vs - hs
        s_temp = jnp.sqrt(jnp.sum(dvs * dvs, axis=0, keepdims=True))   # (1, D)
        vh_s = -_norm_mean(s_temp)

        ce_mean = ce_acc_ref[...] * (1.0 / n_total)                    # (1, 1)
        out_ref[...] = ce_mean + vh_c + vh_s


def my_loss(vc, vs, hc, hs, vhout, dy, *, block_n=512):
    B, D = vc.shape
    N, C = vhout.shape
    # Labels as a lane-padded (N, 1) int32 VMEM block: ~128x more bytes than
    # strictly needed, but negligible next to the logits DMA.
    dy2d = dy.astype(jnp.int32).reshape(N, 1)

    tn = N if N <= block_n else block_n
    grid = (pl.cdiv(N, tn),)

    kernel = functools.partial(myloss_kernel, n_total=N)

    # NOTE: for very large B the (B, D) distance tensors would also need a
    # tiled reduction axis (accumulate partial sum-of-squares into a (1, D)
    # scratch); at typical batch sizes they are small and stay resident.
    out = pl.pallas_call(
        kernel,
        out_shape=jax.ShapeDtypeStruct((1, 1), jnp.float32),
        grid_spec=pltpu.PrefetchScalarGridSpec(
            num_scalar_prefetch=0,
            grid=grid,
            in_specs=[
                pl.BlockSpec((B, D), lambda i: (0, 0)),    # vc (resident)
                pl.BlockSpec((B, D), lambda i: (0, 0)),    # hc (resident)
                pl.BlockSpec((B, D), lambda i: (0, 0)),    # vs (resident)
                pl.BlockSpec((B, D), lambda i: (0, 0)),    # hs (resident)
                pl.BlockSpec((tn, C), lambda i: (i, 0)),   # logits tile
                pl.BlockSpec((tn, 1), lambda i: (i, 0)),   # labels tile
            ],
            out_specs=pl.BlockSpec((1, 1), lambda i: (0, 0)),
            scratch_shapes=[pltpu.VMEM((1, 1), jnp.float32)],  # CE accumulator
        ),
        compiler_params=pltpu.CompilerParams(
            # Single grid axis is a reduction into a resident accumulator.
            dimension_semantics=("arbitrary",)),
    )(vc, hc, vs, hs, vhout, dy2d)
    return out[0, 0]


def my_loss_ref(vc, vs, hc, hs, vhout, dy):
    """Plain-JAX reference for sanity checking."""
    c_temp = jnp.sqrt(jnp.sum((vc - hc) ** 2, axis=0))
    vh_c = jnp.mean((c_temp - jnp.min(c_temp)) / (jnp.max(c_temp) - jnp.min(c_temp)))
    s_temp = jnp.sqrt(jnp.sum((vs - hs) ** 2, axis=0))
    vh_s = -jnp.mean((s_temp - jnp.min(s_temp)) / (jnp.max(s_temp) - jnp.min(s_temp)))
    logp = jax.nn.log_softmax(vhout, axis=-1)
    ce = -jnp.mean(jnp.take_along_axis(logp, dy[:, None], axis=-1))
    return ce + vh_c + vh_s


if __name__ == "__main__":
    key = jax.random.PRNGKey(0)
    k1, k2, k3, k4, k5, k6 = jax.random.split(key, 6)

    B, D = 8, 128     # feature tensors
    N, C = 16, 128    # logits / labels

    vc = jax.random.normal(k1, (B, D), dtype=jnp.float32)
    vs = jax.random.normal(k2, (B, D), dtype=jnp.float32)
    hc = jax.random.normal(k3, (B, D), dtype=jnp.float32)
    hs = jax.random.normal(k4, (B, D), dtype=jnp.float32)
    vhout = jax.random.normal(k5, (N, C), dtype=jnp.float32)
    dy = jax.random.randint(k6, (N,), 0, C, dtype=jnp.int32)

    # block_n=8 exercises the multi-step reduction-grid / accumulator path.
    loss = jax.block_until_ready(my_loss(vc, vs, hc, hs, vhout, dy, block_n=8))
    ref = jax.block_until_ready(my_loss_ref(vc, vs, hc, hs, vhout, dy))

    assert jnp.allclose(loss, ref, rtol=1e-5, atol=1e-5), (loss, ref)
    print("KERNEL_OK")
</pallas_src>

<mosaic_0001>
module attributes {stable_mosaic.version = 11 : i64} {
  func.func @myloss_kernel(%arg0: i32, %arg1: memref<8x128xf32, #tpu.memory_space<vmem>>, %arg2: memref<8x128xf32, #tpu.memory_space<vmem>>, %arg3: memref<8x128xf32, #tpu.memory_space<vmem>>, %arg4: memref<8x128xf32, #tpu.memory_space<vmem>>, %arg5: memref<8x128xf32, #tpu.memory_space<vmem>>, %arg6: memref<8x1xi32, #tpu.memory_space<vmem>>, %arg7: memref<1x1xf32, #tpu.memory_space<vmem>>, %arg8: memref<1x1xf32, #tpu.memory_space<vmem>>) attributes {dimension_semantics = [#tpu.dimension_semantics<arbitrary>], iteration_bounds = array<i64: 2>, scalar_prefetch = 0 : i64, scratch_operands = 1 : i64, tpu.core_type = #tpu.core_type<tc>, window_params = [{pipeline_mode = #tpu.pipeline_mode<synchronous>, transform_indices = @transform_0, window_bounds = array<i64: 8, 128>}, {pipeline_mode = #tpu.pipeline_mode<synchronous>, transform_indices = @transform_1, window_bounds = array<i64: 8, 128>}, {pipeline_mode = #tpu.pipeline_mode<synchronous>, transform_indices = @transform_2, window_bounds = array<i64: 8, 128>}, {pipeline_mode = #tpu.pipeline_mode<synchronous>, transform_indices = @transform_3, window_bounds = array<i64: 8, 128>}, {transform_indices = @transform_4, window_bounds = array<i64: 8, 128>}, {transform_indices = @transform_5, window_bounds = array<i64: 8, 1>}, {pipeline_mode = #tpu.pipeline_mode<synchronous>, transform_indices = @transform_6, window_bounds = array<i64: 1, 1>}]} {
    %c0_i32 = arith.constant 0 : i32
    %0 = arith.cmpi eq, %arg0, %c0_i32 : i32
    %1 = arith.extui %0 : i1 to i32
    %c0_i32_0 = arith.constant 0 : i32
    %2 = arith.cmpi ne, %1, %c0_i32_0 : i32
    scf.if %2 {
      %cst_14 = arith.constant 0.000000e+00 : f32
      %38 = vector.broadcast %cst_14 : f32 to vector<1x1xf32>
      %c0_15 = arith.constant 0 : index
      %c0_16 = arith.constant 0 : index
      %39 = vector.load %arg8[%c0_15, %c0_16] : memref<1x1xf32, #tpu.memory_space<vmem>>, vector<1x1xf32>
      tpu.vector_store %arg8[%c0_15, %c0_16], %38 {strides = array<i32>} : memref<1x1xf32, #tpu.memory_space<vmem>>, vector<1x1xf32>,
    } else {
    }
    %c0 = arith.constant 0 : index
    %c0_1 = arith.constant 0 : index
    %3 = vector.load %arg5[%c0, %c0_1] : memref<8x128xf32, #tpu.memory_space<vmem>>, vector<8x128xf32>
    %cst = arith.constant dense<0xFF800000> : vector<8xf32>
    %4 = vector.multi_reduction <maximumf>, %3, %cst [1] : vector<8x128xf32> to vector<8xf32>
    %5 = vector.shape_cast %4 : vector<8xf32> to vector<8x1xf32>
    %6 = vector.broadcast %5 : vector<8x1xf32> to vector<8x128xf32>
    %7 = arith.subf %3, %6 : vector<8x128xf32>
    %8 = math.exp %7 : vector<8x128xf32>
    %cst_2 = arith.constant dense<0.000000e+00> : vector<8xf32>
    %9 = vector.multi_reduction <add>, %8, %cst_2 [1] : vector<8x128xf32> to vector<8xf32>
    %10 = vector.shape_cast %9 : vector<8xf32> to vector<8x1xf32>
    %11 = math.log %10 : vector<8x1xf32>
    %12 = arith.addf %11, %5 : vector<8x1xf32>
    %c0_3 = arith.constant 0 : index
    %c0_4 = arith.constant 0 : index
    %13 = vector.load %arg6[%c0_3, %c0_4] : memref<8x1xi32, #tpu.memory_space<vmem>>, vector<8x1xi32>
    %14 = tpu.iota {dimensions = array<i32: 1>} : vector<8x128xi32>
    %15 = vector.broadcast %13 : vector<8x1xi32> to vector<8x128xi32>
    %16 = arith.cmpi eq, %14, %15 : vector<8x128xi32>
    %cst_5 = arith.constant 0.000000e+00 : f32
    %17 = vector.broadcast %cst_5 : f32 to vector<8x128xf32>
    %18 = arith.select %16, %3, %17 : vector<8x128xi1>, vector<8x128xf32>
    %cst_6 = arith.constant dense<0.000000e+00> : vector<8xf32>
    %19 = vector.multi_reduction <add>, %18, %cst_6 [1] : vector<8x128xf32> to vector<8xf32>
    %20 = vector.shape_cast %19 : vector<8xf32> to vector<8x1xf32>
    %21 = tpu.iota {dimensions = array<i32: 0>} : vector<8x1xi32>
    %c8_i32 = arith.constant 8 : i32
    %22 = arith.muli %arg0, %c8_i32 : i32
    %23 = vector.broadcast %22 : i32 to vector<8x1xi32>
    %24 = arith.addi %21, %23 : vector<8x1xi32>
    %c16_i32 = arith.constant 16 : i32
    %25 = vector.broadcast %c16_i32 : i32 to vector<8x1xi32>
    %26 = arith.cmpi slt, %24, %25 : vector<8x1xi32>
    %27 = arith.subf %12, %20 : vector<8x1xf32>
    %cst_7 = arith.constant 0.000000e+00 : f32
    %28 = vector.broadcast %cst_7 : f32 to vector<8x1xf32>
    %29 = arith.select %26, %27, %28 : vector<8x1xi1>, vector<8x1xf32>
    %cst_8 = arith.constant dense<0.000000e+00> : vector<1xf32>
    %30 = vector.multi_reduction <add>, %29, %cst_8 [0] : vector<8x1xf32> to vector<1xf32>
    %31 = vector.shape_cast %30 : vector<1xf32> to vector<1x1xf32>
    %c0_9 = arith.constant 0 : index
    %c0_10 = arith.constant 0 : index
    %32 = vector.load %arg8[%c0_9, %c0_10] : memref<1x1xf32, #tpu.memory_space<vmem>>, vector<1x1xf32>
    %33 = arith.addf %32, %31 : vector<1x1xf32>
    %c0_11 = arith.constant 0 : index
    %c0_12 = arith.constant 0 : index
    %34 = vector.load %arg8[%c0_11, %c0_12] : memref<1x1xf32, #tpu.memory_space<vmem>>, vector<1x1xf32>
    tpu.vector_store %arg8[%c0_11, %c0_12], %33 {strides = array<i32>} : memref<1x1xf32, #tpu.memory_space<vmem>>, vector<1x1xf32>,
    %c1_i32 = arith.constant 1 : i32
    %35 = arith.cmpi eq, %arg0, %c1_i32 : i32
    %36 = arith.extui %35 : i1 to i32
    %c0_i32_13 = arith.constant 0 : i32
    %37 = arith.cmpi ne, %36, %c0_i32_13 : i32
    scf.if %37 {
      %c0_14 = arith.constant 0 : index
      %c0_15 = arith.constant 0 : index
      %38 = vector.load %arg1[%c0_14, %c0_15] : memref<8x128xf32, #tpu.memory_space<vmem>>, vector<8x128xf32>
      %c0_16 = arith.constant 0 : index
      %c0_17 = arith.constant 0 : index
      %39 = vector.load %arg2[%c0_16, %c0_17] : memref<8x128xf32, #tpu.memory_space<vmem>>, vector<8x128xf32>
      %c0_18 = arith.constant 0 : index
      %c0_19 = arith.constant 0 : index
      %40 = vector.load %arg3[%c0_18, %c0_19] : memref<8x128xf32, #tpu.memory_space<vmem>>, vector<8x128xf32>
      %c0_20 = arith.constant 0 : index
      %c0_21 = arith.constant 0 : index
      %41 = vector.load %arg4[%c0_20, %c0_21] : memref<8x128xf32, #tpu.memory_space<vmem>>, vector<8x128xf32>
      %42 = arith.subf %38, %39 : vector<8x128xf32>
      %43 = arith.mulf %42, %42 : vector<8x128xf32>
      %cst_22 = arith.constant dense<0.000000e+00> : vector<128xf32>
      %44 = vector.multi_reduction <add>, %43, %cst_22 [0] : vector<8x128xf32> to vector<128xf32>
      %45 = vector.shape_cast %44 : vector<128xf32> to vector<1x128xf32>
      %46 = math.sqrt %45 : vector<1x128xf32>
      %47 = vector.shape_cast %46 : vector<1x128xf32> to vector<1x1x128xf32>
      %cst_23 = arith.constant dense<0x7F800000> : vector<1xf32>
      %48 = vector.multi_reduction <minimumf>, %47, %cst_23 [1, 2] : vector<1x1x128xf32> to vector<1xf32>
      %49 = vector.shape_cast %48 : vector<1xf32> to vector<1x1x1xf32>
      %50 = vector.extract %49[0, 0, 0] : f32 from vector<1x1x1xf32>
      %51 = vector.shape_cast %46 : vector<1x128xf32> to vector<1x1x128xf32>
      %cst_24 = arith.constant dense<0xFF800000> : vector<1xf32>
      %52 = vector.multi_reduction <maximumf>, %51, %cst_24 [1, 2] : vector<1x1x128xf32> to vector<1xf32>
      %53 = vector.shape_cast %52 : vector<1xf32> to vector<1x1x1xf32>
      %54 = vector.extract %53[0, 0, 0] : f32 from vector<1x1x1xf32>
      %55 = vector.shape_cast %46 : vector<1x128xf32> to vector<1x1x128xf32>
      %cst_25 = arith.constant dense<0.000000e+00> : vector<1xf32>
      %56 = vector.multi_reduction <add>, %55, %cst_25 [1, 2] : vector<1x1x128xf32> to vector<1xf32>
      %57 = vector.shape_cast %56 : vector<1xf32> to vector<1x1x1xf32>
      %58 = vector.extract %57[0, 0, 0] : f32 from vector<1x1x1xf32>
      %cst_26 = arith.constant 1.280000e+02 : f32
      %59 = arith.divf %58, %cst_26 : f32
      %60 = arith.subf %59, %50 : f32
      %61 = arith.subf %54, %50 : f32
      %62 = arith.divf %60, %61 : f32
      %63 = arith.subf %40, %41 : vector<8x128xf32>
      %64 = arith.mulf %63, %63 : vector<8x128xf32>
      %cst_27 = arith.constant dense<0.000000e+00> : vector<128xf32>
      %65 = vector.multi_reduction <add>, %64, %cst_27 [0] : vector<8x128xf32> to vector<128xf32>
      %66 = vector.shape_cast %65 : vector<128xf32> to vector<1x128xf32>
      %67 = math.sqrt %66 : vector<1x128xf32>
      %68 = vector.shape_cast %67 : vector<1x128xf32> to vector<1x1x128xf32>
      %cst_28 = arith.constant dense<0x7F800000> : vector<1xf32>
      %69 = vector.multi_reduction <minimumf>, %68, %cst_28 [1, 2] : vector<1x1x128xf32> to vector<1xf32>
      %70 = vector.shape_cast %69 : vector<1xf32> to vector<1x1x1xf32>
      %71 = vector.extract %70[0, 0, 0] : f32 from vector<1x1x1xf32>
      %72 = vector.shape_cast %67 : vector<1x128xf32> to vector<1x1x128xf32>
      %cst_29 = arith.constant dense<0xFF800000> : vector<1xf32>
      %73 = vector.multi_reduction <maximumf>, %72, %cst_29 [1, 2] : vector<1x1x128xf32> to vector<1xf32>
      %74 = vector.shape_cast %73 : vector<1xf32> to vector<1x1x1xf32>
      %75 = vector.extract %74[0, 0, 0] : f32 from vector<1x1x1xf32>
      %76 = vector.shape_cast %67 : vector<1x128xf32> to vector<1x1x128xf32>
      %cst_30 = arith.constant dense<0.000000e+00> : vector<1xf32>
      %77 = vector.multi_reduction <add>, %76, %cst_30 [1, 2] : vector<1x1x128xf32> to vector<1xf32>
      %78 = vector.shape_cast %77 : vector<1xf32> to vector<1x1x1xf32>
      %79 = vector.extract %78[0, 0, 0] : f32 from vector<1x1x1xf32>
      %cst_31 = arith.constant 1.280000e+02 : f32
      %80 = arith.divf %79, %cst_31 : f32
      %81 = arith.subf %80, %71 : f32
      %82 = arith.subf %75, %71 : f32
      %83 = arith.divf %81, %82 : f32
      %cst_32 = arith.constant 0.000000e+00 : f32
      %84 = arith.subf %cst_32, %83 : f32
      %c0_33 = arith.constant 0 : index
      %c0_34 = arith.constant 0 : index
      %85 = vector.load %arg8[%c0_33, %c0_34] : memref<1x1xf32, #tpu.memory_space<vmem>>, vector<1x1xf32>
      %cst_35 = arith.constant 6.250000e-02 : f32
      %86 = vector.broadcast %cst_35 : f32 to vector<1x1xf32>
      %87 = arith.mulf %85, %86 : vector<1x1xf32>
      %88 = vector.broadcast %62 : f32 to vector<1x1xf32>
      %89 = arith.addf %87, %88 : vector<1x1xf32>
      %90 = vector.broadcast %84 : f32 to vector<1x1xf32>
      %91 = arith.addf %89, %90 : vector<1x1xf32>
      %c0_36 = arith.constant 0 : index
      %c0_37 = arith.constant 0 : index
      %92 = vector.load %arg7[%c0_36, %c0_37] : memref<1x1xf32, #tpu.memory_space<vmem>>, vector<1x1xf32>
      tpu.vector_store %arg7[%c0_36, %c0_37], %91 {strides = array<i32>} : memref<1x1xf32, #tpu.memory_space<vmem>>, vector<1x1xf32>,
    } else {
    }
    return
  }
  func.func @transform_0(%arg0: i32) -> (i32, i32) {
    %c0_i32 = arith.constant 0 : i32
    %c0_i32_0 = arith.constant 0 : i32
    %c0_i32_1 = arith.constant 0 : i32
    return %c0_i32, %c0_i32_0 : i32, i32
  }
  func.func @transform_1(%arg0: i32) -> (i32, i32) {
    %c0_i32 = arith.constant 0 : i32
    %c0_i32_0 = arith.constant 0 : i32
    %c0_i32_1 = arith.constant 0 : i32
    return %c0_i32, %c0_i32_0 : i32, i32
  }
  func.func @transform_2(%arg0: i32) -> (i32, i32) {
    %c0_i32 = arith.constant 0 : i32
    %c0_i32_0 = arith.constant 0 : i32
    %c0_i32_1 = arith.constant 0 : i32
    return %c0_i32, %c0_i32_0 : i32, i32
  }
  func.func @transform_3(%arg0: i32) -> (i32, i32) {
    %c0_i32 = arith.constant 0 : i32
    %c0_i32_0 = arith.constant 0 : i32
    %c0_i32_1 = arith.constant 0 : i32
    return %c0_i32, %c0_i32_0 : i32, i32
  }
  func.func @transform_4(%arg0: i32) -> (i32, i32) {
    %c0_i32 = arith.constant 0 : i32
    %c0_i32_0 = arith.constant 0 : i32
    return %arg0, %c0_i32 : i32, i32
  }
  func.func @transform_5(%arg0: i32) -> (i32, i32) {
    %c0_i32 = arith.constant 0 : i32
    %c0_i32_0 = arith.constant 0 : i32
    return %arg0, %c0_i32 : i32, i32
  }
  func.func @transform_6(%arg0: i32) -> (i32, i32) {
    %c0_i32 = arith.constant 0 : i32
    %c0_i32_0 = arith.constant 0 : i32
    %c0_i32_1 = arith.constant 0 : i32
    return %c0_i32, %c0_i32_0 : i32, i32
  }
}

</mosaic_0001>

<bundles_post_ra>
// kernel: tpu_custom_call.1
= control target key start
LH: loop header
LB: loop body
LE: loop exit
PB: predicated region body
PF: predicated region fallthrough
CT: control target
= control target key end

     0   :  { %11 = vsyncpa [#allocation4], 0  ;;  %s1018_s0 = inlined_call_operand.hbm [shape: f32[8,128], index: 0, kind: input, shape index: {}]   ;;  %s1019_s1 = inlined_call_operand.hbm [shape: f32[8,128], index: 1, kind: input, shape index: {}]   ;;  %s1020_s2 = inlined_call_operand.hbm [shape: f32[8,128], index: 2, kind: input, shape index: {}]   ;;  %s1021_s3 = inlined_call_operand.hbm [shape: f32[8,128], index: 3, kind: input, shape index: {}]   ;;  %s1022_s4 = inlined_call_operand.vmem [shape: f32[16,128], index: 4, kind: input, shape index: {}]   ;;  %s1023_s5 = inlined_call_operand.vmem [shape: s32[16,1], index: 5, kind: input, shape index: {}]   ;;  %s1024_s6 = inlined_call_operand.hbm [shape: f32[1,1], index: 6, kind: output, shape index: {}]  }
   0x1   :  { %12 = vsyncpa [#allocation7], 0 }
   0x2   :  { %13 = vsyncpa [#allocation10], 0 }
   0x3   :  { %14 = vsyncpa [#allocation5], 0  ;;  %s930_s21 = smov 0  }
   0x4 LB: > { %s206_s24 = sshll.u32 %s1019_s1, 4  ;;  %s939_s25 = sadd.s32 4294967295, %s885_s21   ;;  %s885_s21 = sphi %s930_s21, %s20_s21   ;;  %s207_s24 = int_to_ptr.hbm [resolvable:$true] %s206_s24 }
   0x5   : > { %p603_p0 = scmp.ge.s32.totalorder %s885_s21, 1  ;;  %p182_p1 = scmp.lt.s32.totalorder %s885_s21, 3 }
   0x6   : > { %p604_p2 = scmp.ne.s32.totalorder %s939_s25, 0  ;;  %p674_p3 = scmp.eq.s32.totalorder %s939_s25, 0 }
   0x7   : > { %p945_p4 = pnand %p603_p0, %p182_p1  ;;  %s887_s27 = smov [#allocation6]  }
   0x8   : > { %s208_s28 = sshll.u32 %s887_s27, 4  ;;  %s194_s7 = sshll.u32 %s1018_s0, 4  ;;  %s209_s28 = int_to_ptr.vmem [resolvable:$true] %s208_s28  ;;  %s195_s7 = int_to_ptr.hbm [resolvable:$true] %s194_s7 }
   0x9   : > { %p661_p5 = pneg %p945_p4  ;;  %s218_s10 = sshll.u32 %s1020_s2, 4  ;;  %s219_s10 = int_to_ptr.hbm [resolvable:$true] %s218_s10 }
   0xa   : > { %s888_s12 = smov [#allocation3]   ;;  %s889_s14 = smov [#allocation8]  }
   0xb   : > { %p959_p6 = pnand %p674_p3, %p661_p5  ;;  %s196_s13 = sshll.u32 %s888_s12, 4  ;;  %s197_s13 = int_to_ptr.vmem [resolvable:$true] %s196_s13 }
   0xc   : > { %s220_s15 = sshll.u32 %s889_s14, 4  ;;  %s230_s18 = sshll.u32 %s1021_s3, 4  ;;  %s221_s15 = int_to_ptr.vmem [resolvable:$true] %s220_s15  ;;  %s231_s18 = int_to_ptr.hbm [resolvable:$true] %s230_s18 }
   0xd   : > { %667 = dma.hbm_to_vmem [thread:$0]  (!%p959_p6), %s207_s24, 128, %s209_s28, [#allocation7]  }
   0xe   : > { %664 = dma.hbm_to_vmem [thread:$0]  (!%p959_p6), %s195_s7, 128, %s197_s13, [#allocation4]  }
   0xf   : > { %670 = dma.hbm_to_vmem [thread:$0]  (!%p959_p6), %s219_s10, 128, %s221_s15, [#allocation7]  }
  0x10   : > { %s890_s19 = smov [#allocation9]   ;;  %259 = sbr.rel (%p945_p4) target bundleno = 674 (0x2a2), region = 44 }
  0x11   : > { %s232_s20 = sshll.u32 %s890_s19, 4  ;;  %s233_s20 = int_to_ptr.vmem [resolvable:$true] %s232_s20 }
  0x12   : > { %673 = dma.hbm_to_vmem [thread:$0]  (!%p959_p6), %s231_s18, 128, %s233_s20, [#allocation10]  }
  0x15   : > { %868 = dma.done.wait (%p674_p3), [#allocation4], 128  }
  0x16   : > { %870 = vsyncadd (%p674_p3), [#allocation4], 4294967168 }
  0x17   : > { %872 = dma.done.wait (%p674_p3), [#allocation7], 256  }
  0x18   : > { %874 = vsyncadd (%p674_p3), [#allocation7], 4294967040 }
  0x19   : > { %876 = dma.done.wait (%p674_p3), [#allocation10], 128  }
  0x1a   : > { %878 = vsyncadd (%p674_p3), [#allocation10], 4294967168  ;;  %p303_p7 = scmp.lt.s32.totalorder %s939_s25, 1 }
  0x1b   : > { %314 = sbr.rel (%p604_p2) target bundleno = 34 (0x22), region = 64 }
  0x1c   : > { %s304_s22 = scalar_select %p303_p7, %s939_s25, 1 }
  0x1e   : > { %s614_s23 = sshll.u32 %s304_s22, 3 }
  0x1f   : > { %s306_s27 = scalar_lea.vmem %s1022_s4, %s614_s23  ;;  %s310_s30 = scalar_lea.vmem %s1023_s5, %s614_s23 }
  0x20   : > { %vm315_vm0 = vcmask 0   ;;  %v891_v0 = vmov 0.0  }
  0x21   : > { %316 = vst.msk [vmem:[#allocation2] sm:$0x1] %vm315_vm0, %v891_v0 }
  0x22 PF: > { %v317_v1 = vld [vmem:[%s306_s27] sm:$0xff]  ;;  %v892_v2 = vmov 0   ;;  %v329_v8 = vlaneseq  ;;  %s617_s7 = sshll.u32 %s939_s25, 3  ;;  %vm354_vm3 = vcmask 0   ;;  %p618_p8 = scmp.ne.s32.totalorder %s939_s25, 1 }
  0x23   : > { %318 = vmax.xlane.f32.xlu0 %v317_v1  ;;  %v328_v3 = vld [vmem:[%s310_s30] sm:$0xff]  ;;  %v341_v14 = vstv %s617_s7 }
  0x24   : > { %700 = vset.pattern.permute.xlu0 %v892_v2  ;;  %v330_v9 = vand.u32 127, %v329_v8  ;;  %v339_v13 = vshrl.u32 %v329_v8, 7 }
  0x26   : > { %v342_v16 = vadd.s32 %v341_v14, %v339_v13 }
  0x28   : > { %vm343_vm2 = vcmp.lt.s32.totalorder %v342_v16, 16  ;;  %v352_v27 = vld [vmem:[#allocation2] sm:$0x1] }
  0x37   : > { %332 = vperm.xlu0 %700, %v328_v3  }
  0x96   : > { %v319_v4 = vpop.xlane.xlu0 %318 }
  0x97   : > { %v320_v5 = vsub.f32 %v317_v1, %v319_v4 }
  0x99   : > { %v321_v6 = vmul.f32 1.442695, %v320_v5 }
  0x9b   : > { %701 = vpow2.f32 %v321_v6 }
  0xa1   : > { %v702_v7 = vpop.eup %701 }
  0xa2   : > { %323 = vadd.xlane.f32.xlu1 %v702_v7 }
  0xa9   : > { %v333_v10 = vpop.permute.xlu0 %332 }
  0xaa   : > { %vm334_vm1 = vcmp.eq.s32.totalorder %v330_v9, %v333_v10 }
  0xab   : > { %v335_v11 = vsel %vm334_vm1, %v317_v1, 0.0 }
  0xac   : > { %336 = vadd.xlane.f32.xlu1 %v335_v11 }
 0x115   : > { %v324_v12 = vpop.xlane.xlu1 %323 }
 0x116   : > { %703 = vlog2.f32 %v324_v12 }
 0x11c   : > { %v704_v15 = vpop.eup %703 }
 0x11d   : > { %v326_v17 = vmul.f32 0.6931472, %v704_v15 }
 0x11f   : > { %v327_v18 = vadd.f32 %v326_v17, %v319_v4  ;;  %v337_v19 = vpop.xlane.xlu1 %336 }
 0x121   : > { %v344_v20 = vsub.f32 %v327_v18, %v337_v19 }
 0x123   : > { %v345_v21 = vsel %vm343_vm2, %v344_v20, 0.0 }
 0x124   : > { %v346_v22 = vrot.slane %v345_v21, 4 }
 0x126   : > { %v347_v23 = vadd.f32 %v346_v22, %v345_v21 }
 0x128   : > { %v348_v24 = vrot.slane %v347_v23, 2 }
 0x12a   : > { %v349_v25 = vadd.f32 %v348_v24, %v347_v23 }
 0x12c   : > { %v350_v26 = vrot.slane %v349_v25, 1 }
 0x12e   : > { %v351_v28 = vadd.f32 %v350_v26, %v349_v25  ;;  %359 = sbr.rel (%p618_p8) target bundleno = 669 (0x29d), region = 68 }
 0x130   : > { %v353_v29 = vadd.f32 %v352_v27, %v351_v28 }
 0x132   : > { %355 = vst.msk [vmem:[#allocation2] sm:$0x1] %vm354_vm3, %v353_v29 }
 0x133   : > { %v360_v30 = vld [vmem:[#allocation3] sm:$0xff]  ;;  %v361_v31 = vld [vmem:[#allocation6] sm:$0xff]  ;;  %v362_v39 = vld [vmem:[#allocation8] sm:$0xff]  ;;  %vm390_vm6 = vcmask 1040384   ;;  %v893_v8 = vmov 128.0  }
 0x134   : > { %v364_v32 = vsub.f32 %v360_v30, %v361_v31  ;;  %v363_v40 = vld [vmem:[#allocation9] sm:$0xff] }
 0x135   : > { %v429_v42 = vsub.f32 %v362_v39, %v363_v40 }
 0x136   : > { %v365_v33 = vmul.f32 %v364_v32, %v364_v32 }
 0x137   : > { %v430_v43 = vmul.f32 %v429_v42, %v429_v42 }
 0x138   : > { %v366_v34 = vrot.slane %v365_v33, 4 }
 0x139   : > { %v431_v44 = vrot.slane %v430_v43, 4 }
 0x13a   : > { %v367_v35 = vadd.f32 %v366_v34, %v365_v33 }
 0x13b   : > { %v432_v45 = vadd.f32 %v431_v44, %v430_v43 }
 0x13c   : > { %v368_v36 = vrot.slane %v367_v35, 2 }
 0x13d   : > { %v433_v48 = vrot.slane %v432_v45, 2 }
 0x13e   : > { %v369_v37 = vadd.f32 %v368_v36, %v367_v35 }
 0x13f   : > { %v434_v50 = vadd.f32 %v433_v48, %v432_v45 }
 0x140   : > { %v370_v38 = vrot.slane %v369_v37, 1 }
 0x141   : > { %v435_v52 = vrot.slane %v434_v50, 1 }
 0x142   : > { %v371_v41 = vadd.f32 %v370_v38, %v369_v37 }
 0x143   : > { %v436_v54 = vadd.f32 %v435_v52, %v434_v50 }
 0x144   : > { %705 = vrsqrt.f32 %v371_v41  ;;  %vm379_vm4 = vcmp.eq.f32.partialorder %v371_v41, inf  ;;  %v382_v56 = vand.u32 2147483648, %v371_v41  ;;  %vm381_vm5 = vcmp.eq.f32.partialorder %v371_v41, 0.0 }
 0x145   : > { %707 = vrsqrt.f32 %v436_v54  ;;  %vm444_vm7 = vcmp.eq.f32.partialorder %v436_v54, inf  ;;  %v447_v3 = vand.u32 2147483648, %v436_v54  ;;  %vm446_vm8 = vcmp.eq.f32.partialorder %v436_v54, 0.0 }
 0x146   : > { %709 = vrcp.f32 %v893_v8 }
 0x14a   : > { %v706_v46 = vpop.eup %705 }
 0x14b   : > { %v373_v47 = vmul.f32 %v706_v46, %v371_v41  ;;  %v708_v60 = vpop.eup %707 }
 0x14c   : > { %v438_v62 = vmul.f32 %v708_v60, %v436_v54  ;;  %v710_v9 = vpop.eup %709 }
 0x14d   : > { %v374_v49 = vmul.f32 %v706_v46, %v373_v47  ;;  %v402_v10 = vmul.f32 128.0, %v710_v9  ;;  %vm406_vm9 = vweird.f32 %v710_v9 }
 0x14e   : > { %v439_v63 = vmul.f32 %v708_v60, %v438_v62 }
 0x14f   : > { %v375_v51 = vmul.f32 0.5, %v374_v49  ;;  %v403_v12 = vsub.f32 1.0, %v402_v10 }
 0x150   : > { %v440_v0 = vmul.f32 0.5, %v439_v63 }
 0x151   : > { %v376_v53 = vsub.f32 1.5, %v375_v51  ;;  %v404_v16 = vmul.f32 %v710_v9, %v403_v12 }
 0x152   : > { %v441_v1 = vsub.f32 1.5, %v440_v0 }
 0x153   : > { %v377_v55 = vmul.f32 %v706_v46, %v376_v53  ;;  %v405_v20 = vadd.f32 %v710_v9, %v404_v16 }
 0x154   : > { %v442_v2 = vmul.f32 %v708_v60, %v441_v1 }
 0x155   : > { %v378_v57 = vmul.f32 %v377_v55, %v371_v41  ;;  %v407_v23 = vsel %vm406_vm9, %v710_v9, %v405_v20  ;;  %v494_v55 = vld [vmem:[#allocation2] sm:$0x1] }
 0x156   : > { %v443_v4 = vmul.f32 %v442_v2, %v436_v54 }
 0x157   : > { %v380_v58 = vsel %vm379_vm4, %v371_v41, %v378_v57 }
 0x158   : > { %v383_v59 = vsel %vm381_vm5, %v382_v56, %v380_v58  ;;  %v445_v5 = vsel %vm444_vm7, %v436_v54, %v443_v4  ;;  %v495_v56 = vmul.f32 0.0625, %v494_v55 }
 0x159   : > { %384 = vmin.xlane.f32.xlu0 %v383_v59  ;;  %v391_v61 = vsel %vm390_vm6, %v383_v59, 0.0  ;;  %v448_v6 = vsel %vm446_vm8, %v447_v3, %v445_v5 }
 0x15a   : > { %392 = vadd.xlane.f32.xlu1 %v391_v61  ;;  %452 = vmax.xlane.f32.xlu2 %v448_v6  ;;  %v455_v7 = vsel %vm390_vm6, %v448_v6, 0.0 }
 0x161   : > { %387 = vmax.xlane.f32.xlu0 %v383_v59 }
 0x162   : > { %449 = vmin.xlane.f32.xlu1 %v448_v6  ;;  %456 = vadd.xlane.f32.xlu2 %v455_v7 }
 0x1cc   : > { %v385_v11 = vpop.xlane.xlu0 %384 }
 0x1cd   : > { %623 = vpush %v385_v11  ;;  %v393_v13 = vpop.xlane.xlu1 %392  ;;  %v453_v24 = vpop.xlane.xlu2 %452 }
 0x1ce   : > { %v394_v14 = vrot.slane %v393_v13, 4 }
 0x1d0   : > { %v395_v15 = vadd.f32 %v394_v14, %v393_v13 }
 0x1d2   : > { %v396_v17 = vrot.slane %v395_v15, 2 }
 0x1d4   : > { %v388_v18 = vpop.xlane.xlu0 %387  ;;  %v397_v19 = vadd.f32 %v396_v17, %v395_v15 }
 0x1d5   : > { %625 = vpush %v388_v18  ;;  %v457_v25 = vpop.xlane.xlu2 %456  ;;  %v450_v40 = vpop.xlane.xlu1 %449 }
 0x1d6   : > { %v398_v21 = vrot.slane %v397_v19, 1  ;;  %v458_v26 = vrot.slane %v457_v25, 4 }
 0x1d8   : > { %v399_v22 = vadd.f32 %v398_v21, %v397_v19  ;;  %v459_v28 = vadd.f32 %v458_v26, %v457_v25 }
 0x1da   : > { %627 = vpush %v399_v22  ;;  %v460_v29 = vrot.slane %v459_v28, 2 }
 0x1db   : > { %629 = vpush %v407_v23 }
 0x1dc   : > { %v461_v32 = vadd.f32 %v460_v29, %v459_v28 }
 0x1de   : > { %v462_v37 = vrot.slane %v461_v32, 1 }
 0x1e0   : > { %v463_v43 = vadd.f32 %v462_v37, %v461_v32 }
 0x1fe   : > { %s624_s8 = spop %623 }
 0x206   : > { %s626_s9 = spop %625 }
 0x207   : > { %s411_s10 = ssub.f32 %s626_s9, %s624_s8 }
 0x209   : > { %v412_v27 = vstv %s411_s10 }
 0x20a   : > { %711 = vrcp.f32 %v412_v27  ;;  %v424_v34 = vand.u32 2147483648, %v412_v27  ;;  %v422_v36 = vand.u32 2147483647, %v412_v27  ;;  %vm418_vm11 = vweird.f32 %v412_v27 }
 0x20b   : > { %s628_s11 = spop %627 }
 0x20c   : > { %s1003_s12 = spop %629  ;;  %v425_v39 = vor.u32 1.1754944e-38, %v424_v34  ;;  %vm423_vm13 = vcmp.eq.f32.partialorder %v422_v36, 8.507059e+37 }
 0x20d   : > { %s409_s13 = smul.f32 %s1003_s12, %s628_s11 }
 0x20f   : > { %s1006_s14 = ssub.f32 %s409_s13, %s624_s8 }
 0x210   : > { %v712_v30 = vpop.eup %711 }
 0x211   : > { %v414_v31 = vmul.f32 %v712_v30, %v412_v27  ;;  %vm419_vm10 = vweird.f32 %v712_v30 }
 0x212   : > { %vm420_vm12 = vmor %vm418_vm11, %vm419_vm10 }
 0x213   : > { %v415_v33 = vsub.f32 1.0, %v414_v31 }
 0x215   : > { %v416_v35 = vmul.f32 %v712_v30, %v415_v33 }
 0x217   : > { %v417_v38 = vadd.f32 %v712_v30, %v416_v35 }
 0x219   : > { %v421_v41 = vsel %vm420_vm12, %v712_v30, %v417_v38 }
 0x21a   : > { %v426_v42 = vsel %vm423_vm13, %v425_v39, %v421_v41 }
 0x21b   : > { %631 = vpush %v426_v42 }
 0x21c   : > { %633 = vpush %v450_v40 }
 0x21d   : > { %635 = vpush %v453_v24 }
 0x21e   : > { %637 = vpush %v463_v43 }
 0x24c   : > { %s632_s15 = spop %631 }
 0x24d   : > { %s428_s16 = smul.f32 %s632_s15, %s1006_s14  ;;  %s634_s17 = spop %633 }
 0x24e   : > { %s636_s18 = spop %635 }
 0x24f   : > { %s475_s19 = ssub.f32 %s636_s18, %s634_s17  ;;  %s638_s20 = spop %637  ;;  %v496_v57 = vstv %s428_s16 }
 0x250   : > { %s473_s22 = smul.f32 %s638_s20, %s1003_s12  ;;  %v497_v58 = vadd.f32 %v496_v57, %v495_v56 }
 0x251   : > { %v476_v44 = vstv %s475_s19 }
 0x252   : > { %713 = vrcp.f32 %v476_v44  ;;  %v488_v48 = vand.u32 2147483648, %v476_v44  ;;  %v486_v50 = vand.u32 2147483647, %v476_v44  ;;  %vm482_vm15 = vweird.f32 %v476_v44  ;;  %s474_s23 = ssub.f32 %s473_s22, %s634_s17 }
 0x254   : > { %v489_v52 = vor.u32 1.1754944e-38, %v488_v48  ;;  %vm487_vm1 = vcmp.eq.f32.partialorder %v486_v50, 8.507059e+37 }
 0x258   : > { %v714_v45 = vpop.eup %713 }
 0x259   : > { %v478_v46 = vmul.f32 %v714_v45, %v476_v44  ;;  %vm483_vm14 = vweird.f32 %v714_v45 }
 0x25a   : > { %vm484_vm0 = vmor %vm482_vm15, %vm483_vm14 }
 0x25b   : > { %v479_v47 = vsub.f32 1.0, %v478_v46 }
 0x25d   : > { %v480_v49 = vmul.f32 %v714_v45, %v479_v47 }
 0x25f   : > { %v481_v51 = vadd.f32 %v714_v45, %v480_v49 }
 0x261   : > { %v485_v53 = vsel %vm484_vm0, %v714_v45, %v481_v51 }
 0x262   : > { %v490_v54 = vsel %vm487_vm1, %v489_v52, %v485_v53 }
 0x263   : > { %639 = vpush %v490_v54 }
 0x294   : > { %s640_s24 = spop %639 }
 0x295   : > { %s492_s26 = smul.f32 %s640_s24, %s474_s23 }
 0x297   : > { %s493_s27 = ssub.f32 0.0, %s492_s26 }
 0x299   : > { %v498_v59 = vstv %s493_s27 }
 0x29a   : > { %v499_v60 = vadd.f32 %v498_v59, %v497_v58 }
 0x29c   : > { %500 = vst.msk [vmem:[#allocation11] sm:$0x1] %vm354_vm3, %v499_v60 }
 0x29d PF: > { %p682_p9 = scmp.eq.s32.totalorder %s939_s25, 1  ;;  %s894_s28 = smov [#allocation11]  }
 0x29e   : > { %s507_s29 = sshll.u32 %s894_s28, 4  ;;  %s509_s8 = sshll.u32 %s1024_s6, 4  ;;  %s508_s29 = int_to_ptr.vmem [resolvable:$true] %s507_s29  ;;  %s510_s8 = int_to_ptr.hbm [resolvable:$true] %s509_s8 }
 0x29f   : > { %658 = dma.vmem_to_hbm [thread:$0]  (%p682_p9), %s508_s29, 16, %s510_s8, [#allocation5]  }
 0x2a0   : > { %880 = dma.done.wait (%p682_p9), [#allocation5], 16  }
 0x2a1   : > { %882 = vsyncadd (%p682_p9), [#allocation5], 4294967280 }
 0x2a2 PF: > { %s20_s21 = sadd.s32 1, %s885_s21  }
 0x2a3   : > { %p17_p10 = scmp.ge.s32.totalorder %s20_s21, 4  }
 0x2a5   :  { %19 = sbr.rel (!%p17_p10) target bundleno = 4 (0x4), region = 99 }
 0x2aa   :  { %523 = vsyncpa [#allocation4], 1 }
 0x2ab   :  { %525 = vsyncpa [#allocation4 + $0x1], 1 }
 0x2ac   :  { %526 = vsyncpa [#allocation7], 1 }
 0x2ad   :  { %527 = vsyncpa [#allocation10], 1 }
 0x2ae   :  { %528 = vsyncpa [#allocation5], 1 }
 0x2af   :  { %530 = vsyncpa [#allocation5 + $0x1], 1 }

</bundles_post_ra>
